<compile_context>
chip_gen: v5e
topology: v5e:2x2
jax: 0.10.0
libtpu: 0.0.40
codegen_flags: <defaults>
</compile_context>

<pallas_src>
import math
import jax
import jax.numpy as jnp
from jax.experimental import pallas as pl
from jax.experimental.pallas import tpu as pltpu


# --------------------------------------------------------------------------- #
# Kernel
# --------------------------------------------------------------------------- #
def lstm_cell_kernel(x_ref, h_ref, c_ref, wx_ref, wh_ref, b_ref,
                     new_h_ref, new_c_ref):
    """One (hidden tile ih, batch tile ib) step of the LSTM cell update.

    x_ref  : (tb, In)        activations (compute dtype, e.g. bf16)
    h_ref  : (tb, H)         previous hidden state (full H: contraction dim)
    c_ref  : (tb, th)        previous cell-state tile (caller dtype)
    wx_ref : (1, In, 4*th)   packed input->gates weights for this hidden tile
    wh_ref : (1, H, 4*th)    packed hidden->gates weights for this hidden tile
    b_ref  : (1, 1, 4*th)    f32 bias (forget-gate +1 already folded in)
    """
    th = new_h_ref.shape[-1]

    # All four gates in one wide MXU contraction per operand; accumulate f32.
    gates = jnp.dot(x_ref[...], wx_ref[0], preferred_element_type=jnp.float32)
    gates = gates + jnp.dot(h_ref[...], wh_ref[0],
                            preferred_element_type=jnp.float32)
    gates = gates + b_ref[0]                     # (1, 4*th) broadcast over tb

    # Packed gate order along the 4*th axis: [ i | f | z | o ] (PyTorch chunk
    # order).  Consume the gates incrementally so i/f/z/o tiles are never all
    # live at once (keeps vreg pressure / spills down at large tb*th).
    c = c_ref[...].astype(jnp.float32)
    new_c = jax.nn.sigmoid(gates[:, th:2 * th]) * c            # f * c  (+1 in bias)
    new_c = new_c + (jax.nn.sigmoid(gates[:, :th])             # + i * z
                     * jnp.tanh(gates[:, 2 * th:3 * th]))
    new_h = jax.nn.sigmoid(gates[:, 3 * th:]) * jnp.tanh(new_c)

    new_c_ref[...] = new_c                                     # cell state stays f32
    new_h_ref[...] = new_h.astype(new_h_ref.dtype)


# --------------------------------------------------------------------------- #
# Tiling / budgets
# --------------------------------------------------------------------------- #
def _pick_tile(dim, preferred, align):
    """Largest multiple of `align` that divides `dim`, capped at `preferred`.
    Falls back to the full dim (a full-extent block is always legal)."""
    if dim <= preferred:
        return dim
    t = (preferred // align) * align
    while t >= align:
        if dim % t == 0:
            return t
        t -= align
    return dim


def _vmem_budgets():
    """(vmem_limit_bytes, weight_budget_bytes), generation-aware.

    128 MiB VMEM parts (v5e/v6e): big scoped limit, big weight tiles so th
    usually covers full H.  64 MiB parts (v7x): smaller limit / weight budget
    so double-buffered weight blocks + activations stay well under physical.
    """
    mib = 1024 * 1024
    try:
        phys = int(pltpu.get_tpu_info().vmem_capacity_bytes)
    except Exception:
        phys = 64 * mib                      # conservative: assume v7x-class
    if phys >= 96 * mib:                     # v5e / v6e (128 MiB physical)
        return 80 * mib, 24 * mib
    return 40 * mib, 8 * mib                 # v7x (64 MiB physical per TC)


def _choose_hidden_tile(input_size, hidden_size, compute_dtype, weight_budget):
    itemsize = jnp.dtype(compute_dtype).itemsize
    bytes_per_hidden_col = (input_size + hidden_size) * 4 * itemsize
    max_th = max(128, weight_budget // bytes_per_hidden_col)
    return _pick_tile(hidden_size, max_th, 128)


# --------------------------------------------------------------------------- #
# One-time parameter packing (hoisted out of the per-step path)
# --------------------------------------------------------------------------- #
def pack_lstm_params(W_ih, W_hh, bias, *, th=None, compute_dtype=jnp.bfloat16):
    """Repack (W_ih, W_hh, bias) once at parameter-load time.

    Returns (wx, wh, b):
      wx : (H//th, In, 4*th)  compute_dtype   wx[t, k, g*th+u] = W_ih[g*H + t*th + u, k]
      wh : (H//th, H,  4*th)  compute_dtype   wh[t, k, g*th+u] = W_hh[g*H + t*th + u, k]
      b  : (H//th, 1,  4*th)  f32             forget-gate +1 folded in
    so each hidden tile's four gate column-blocks are lane-contiguous and the
    kernel needs a single wide contraction per operand.
    """
    four_h, input_size = W_ih.shape
    H = four_h // 4
    if th is None:
        _, weight_budget = _vmem_budgets()
        th = _choose_hidden_tile(input_size, H, compute_dtype, weight_budget)
    assert H % th == 0, (H, th)
    nT = H // th

    def pack_w(W):                                    # (4H, K) -> (nT, K, 4*th)
        K = W.shape[1]
        return (W.reshape(4, nT, th, K)
                 .transpose(1, 3, 0, 2)
                 .reshape(nT, K, 4 * th)
                 .astype(compute_dtype))

    wx = pack_w(W_ih)
    wh = pack_w(W_hh)

    b = bias.astype(jnp.float32).at[H:2 * H].add(1.0)         # fold forget +1
    b = b.reshape(4, nT, th).transpose(1, 0, 2).reshape(nT, 1, 4 * th)
    return wx, wh, b


# --------------------------------------------------------------------------- #
# Forward wrapper
# --------------------------------------------------------------------------- #
def lstm_cell_forward(x, state, packed, *, tb=None):
    """Pallas equivalent of LSTMCell.forward.

    x:      (B, input_size)
    state:  (h, c), each (B, hidden_size)
    packed: output of pack_lstm_params (call it ONCE at parameter load)
    returns (new_h, (new_h, new_c)) like the PyTorch module.
    new_c is always f32 (long-recurrence accuracy), new_h keeps h.dtype.
    """
    h, c = state
    wx, wh, b = packed
    nT, input_size, four_th = wx.shape
    th = four_th // 4
    H = nT * th
    B = x.shape[0]
    compute_dtype = wx.dtype
    assert x.shape == (B, input_size)
    assert h.shape == (B, H) and c.shape == (B, H)

    if tb is None:
        tb = _pick_tile(B, 256, 8)       # cap tb to bound epilogue vreg pressure
    assert B % tb == 0, (B, tb)

    # Cast activations to the (bf16) compute dtype: halves activation DMA and
    # uses the native MXU path.  Cell state stays in its own dtype (f32).
    xc = x.astype(compute_dtype)
    hc = h.astype(compute_dtype)

    vmem_limit, _ = _vmem_budgets()

    bytes_accessed = int(
        xc.size * xc.dtype.itemsize
        + hc.size * hc.dtype.itemsize
        + c.size * c.dtype.itemsize
        + wx.size * wx.dtype.itemsize
        + wh.size * wh.dtype.itemsize
        + b.size * b.dtype.itemsize
        + B * H * (jnp.dtype(h.dtype).itemsize + 4)     # new_h + new_c(f32)
    )
    cost = pl.CostEstimate(
        flops=2 * B * (input_size + H) * 4 * H,
        transcendentals=5 * B * H,
        bytes_accessed=bytes_accessed,
    )

    # Grid: hidden tiles OUTER ("parallel": megacore shards weights on v7x),
    # batch tiles INNER ("arbitrary"): the weight block index is constant
    # along the inner axis, so the weight is the stationary operand and is
    # DMA'd from HBM only once per hidden tile.
    grid = (nT, B // tb)

    new_h, new_c = pl.pallas_call(
        lstm_cell_kernel,
        out_shape=(
            jax.ShapeDtypeStruct((B, H), h.dtype),
            jax.ShapeDtypeStruct((B, H), jnp.float32),   # cell state forced to f32
        ),
        grid=grid,
        in_specs=[
            pl.BlockSpec((tb, input_size), lambda ih, ib: (ib, 0)),
            pl.BlockSpec((tb, H), lambda ih, ib: (ib, 0)),
            pl.BlockSpec((tb, th), lambda ih, ib: (ib, ih)),
            pl.BlockSpec((1, input_size, 4 * th), lambda ih, ib: (ih, 0, 0)),
            pl.BlockSpec((1, H, 4 * th), lambda ih, ib: (ih, 0, 0)),
            pl.BlockSpec((1, 1, 4 * th), lambda ih, ib: (ih, 0, 0)),
        ],
        out_specs=(
            pl.BlockSpec((tb, th), lambda ih, ib: (ib, ih)),
            pl.BlockSpec((tb, th), lambda ih, ib: (ib, ih)),
        ),
        compiler_params=pltpu.CompilerParams(
            dimension_semantics=("parallel", "arbitrary"),
            vmem_limit_bytes=vmem_limit,
        ),
        cost_estimate=cost,
    )(xc, hc, c, wx, wh, b)

    return new_h, (new_h, new_c)


# --------------------------------------------------------------------------- #
# Pure-JAX references and self-test
# --------------------------------------------------------------------------- #
def lstm_cell_reference(x, state, W_ih, W_hh, bias, compute_dtype=None):
    """Mirror of the PyTorch forward.  If compute_dtype is given, the matmul
    operands are rounded to it (f32 accumulation) to match the kernel's MXU
    operand precision."""
    h, c = state
    if compute_dtype is None:
        hp = jax.lax.Precision.HIGHEST
        gates = (jnp.dot(x, W_ih.T, precision=hp)
                 + jnp.dot(h, W_hh.T, precision=hp) + bias)
    else:
        gates = (jnp.dot(x.astype(compute_dtype), W_ih.T.astype(compute_dtype),
                         preferred_element_type=jnp.float32)
                 + jnp.dot(h.astype(compute_dtype), W_hh.T.astype(compute_dtype),
                           preferred_element_type=jnp.float32)
                 + bias.astype(jnp.float32))
    hs = h.shape[1]
    i, f, z, o = (gates[:, k * hs:(k + 1) * hs] for k in range(4))
    i = jax.nn.sigmoid(i)
    f = jax.nn.sigmoid(f + 1.0)
    z = jnp.tanh(z)
    o = jax.nn.sigmoid(o)
    new_c = f * c.astype(jnp.float32) + i * z
    new_h = (o * jnp.tanh(new_c)).astype(h.dtype)
    return new_h, (new_h, new_c)


def _make_inputs(key, batch, input_size, hidden_size):
    kx, kh, kc, kwih, kwhh = jax.random.split(key, 5)
    # reset_parameters(): W_* ~ U(-1/sqrt(H), 1/sqrt(H)), bias = 0.
    std = 1.0 / math.sqrt(hidden_size)
    W_ih = jax.random.uniform(kwih, (4 * hidden_size, input_size),
                              minval=-std, maxval=std, dtype=jnp.float32)
    W_hh = jax.random.uniform(kwhh, (4 * hidden_size, hidden_size),
                              minval=-std, maxval=std, dtype=jnp.float32)
    bias = jnp.zeros((4 * hidden_size,), dtype=jnp.float32)
    x = jax.random.normal(kx, (batch, input_size), dtype=jnp.float32)
    h0 = jax.random.normal(kh, (batch, hidden_size), dtype=jnp.float32)
    c0 = jax.random.normal(kc, (batch, hidden_size), dtype=jnp.float32)
    return x, h0, c0, W_ih, W_hh, bias


def _check(x, h0, c0, W_ih, W_hh, bias, *, th=None, tb=None):
    packed = pack_lstm_params(W_ih, W_hh, bias, th=th)        # hoisted repack
    out_h, (new_h, new_c) = lstm_cell_forward(x, (h0, c0), packed, tb=tb)
    jax.block_until_ready((out_h, new_h, new_c))

    # Tight check against a reference with matched (bf16) operand precision.
    ref_h_b, (_, ref_c_b) = lstm_cell_reference(
        x, (h0, c0), W_ih, W_hh, bias, compute_dtype=jnp.bfloat16)
    assert jnp.allclose(out_h, ref_h_b, atol=1e-2, rtol=1e-2)
    assert jnp.allclose(new_h, ref_h_b, atol=1e-2, rtol=1e-2)
    assert jnp.allclose(new_c, ref_c_b, atol=1e-2, rtol=1e-2)

    # Looser check against the full-f32 HIGHEST-precision reference
    # (difference is the deliberate bf16 operand rounding).
    ref_h, (_, ref_c) = lstm_cell_reference(x, (h0, c0), W_ih, W_hh, bias)
    assert jnp.allclose(out_h, ref_h, atol=6e-2, rtol=6e-2)
    assert jnp.allclose(new_c, ref_c, atol=6e-2, rtol=6e-2)


if __name__ == "__main__":
    key = jax.random.PRNGKey(0)
    k1, k2 = jax.random.split(key, 2)

    # Config 1: tiny shapes matching the module's defaults (single grid cell,
    # full-extent blocks).
    _check(*_make_inputs(k1, batch=8, input_size=16, hidden_size=32))

    # Config 2: forces the tiled, weight-stationary path: grid = (H//th, B//tb)
    # = (2, 2) with the batch axis inner and 4*th = 512-wide fused gate matmul.
    _check(*_make_inputs(k2, batch=16, input_size=128, hidden_size=256),
           th=128, tb=8)

    print("KERNEL_OK")
</pallas_src>

<mosaic_0001>
module attributes {stable_mosaic.version = 11 : i64} {
  func.func @lstm_cell_kernel(%arg0: i32, %arg1: i32, %arg2: memref<8x16xbf16, #tpu.memory_space<vmem>>, %arg3: memref<8x32xbf16, #tpu.memory_space<vmem>>, %arg4: memref<8x32xf32, #tpu.memory_space<vmem>>, %arg5: memref<1x16x128xbf16, #tpu.memory_space<vmem>>, %arg6: memref<1x32x128xbf16, #tpu.memory_space<vmem>>, %arg7: memref<1x1x128xf32, #tpu.memory_space<vmem>>, %arg8: memref<8x32xf32, #tpu.memory_space<vmem>>, %arg9: memref<8x32xf32, #tpu.memory_space<vmem>>) attributes {dimension_semantics = [#tpu.dimension_semantics<parallel>, #tpu.dimension_semantics<arbitrary>], iteration_bounds = array<i64: 1, 1>, scalar_prefetch = 0 : i64, scratch_operands = 0 : i64, tpu.core_type = #tpu.core_type<tc>, window_params = [{transform_indices = @transform_0, window_bounds = array<i64: 8, 16>}, {transform_indices = @transform_1, window_bounds = array<i64: 8, 32>}, {transform_indices = @transform_2, window_bounds = array<i64: 8, 32>}, {transform_indices = @transform_3, window_bounds = array<i64: 1, 16, 128>}, {transform_indices = @transform_4, window_bounds = array<i64: 1, 32, 128>}, {transform_indices = @transform_5, window_bounds = array<i64: 1, 1, 128>}, {transform_indices = @transform_6, window_bounds = array<i64: 8, 32>}, {transform_indices = @transform_7, window_bounds = array<i64: 8, 32>}]} {
    %c0 = arith.constant 0 : index
    %c0_0 = arith.constant 0 : index
    %0 = vector.load %arg2[%c0, %c0_0] : memref<8x16xbf16, #tpu.memory_space<vmem>>, vector<8x16xbf16>
    %c0_1 = arith.constant 0 : index
    %c0_2 = arith.constant 0 : index
    %c0_3 = arith.constant 0 : index
    %1 = vector.load %arg5[%c0_1, %c0_2, %c0_3] : memref<1x16x128xbf16, #tpu.memory_space<vmem>>, vector<1x16x128xbf16>
    %2 = vector.shape_cast %1 : vector<1x16x128xbf16> to vector<16x128xbf16>
    %cst = arith.constant dense<0.000000e+00> : vector<8x128xf32>
    %3 = tpu.matmul %0, %2, %cst {dimension_numbers = #tpu.dot_dimension_numbers<[1], [0], [0], [1], [0, 0, 1, 1], [], []>} : vector<8x16xbf16>, vector<16x128xbf16>, vector<8x128xf32> -> vector<8x128xf32>
    %c0_4 = arith.constant 0 : index
    %c0_5 = arith.constant 0 : index
    %4 = vector.load %arg3[%c0_4, %c0_5] : memref<8x32xbf16, #tpu.memory_space<vmem>>, vector<8x32xbf16>
    %c0_6 = arith.constant 0 : index
    %c0_7 = arith.constant 0 : index
    %c0_8 = arith.constant 0 : index
    %5 = vector.load %arg6[%c0_6, %c0_7, %c0_8] : memref<1x32x128xbf16, #tpu.memory_space<vmem>>, vector<1x32x128xbf16>
    %6 = vector.shape_cast %5 : vector<1x32x128xbf16> to vector<32x128xbf16>
    %cst_9 = arith.constant dense<0.000000e+00> : vector<8x128xf32>
    %7 = tpu.matmul %4, %6, %cst_9 {dimension_numbers = #tpu.dot_dimension_numbers<[1], [0], [0], [1], [0, 0, 1, 1], [], []>} : vector<8x32xbf16>, vector<32x128xbf16>, vector<8x128xf32> -> vector<8x128xf32>
    %8 = arith.addf %3, %7 : vector<8x128xf32>
    %c0_10 = arith.constant 0 : index
    %c0_11 = arith.constant 0 : index
    %c0_12 = arith.constant 0 : index
    %9 = vector.load %arg7[%c0_10, %c0_11, %c0_12] : memref<1x1x128xf32, #tpu.memory_space<vmem>>, vector<1x1x128xf32>
    %10 = vector.shape_cast %9 : vector<1x1x128xf32> to vector<1x128xf32>
    %11 = vector.broadcast %10 : vector<1x128xf32> to vector<8x128xf32>
    %12 = arith.addf %8, %11 : vector<8x128xf32>
    %c0_13 = arith.constant 0 : index
    %c0_14 = arith.constant 0 : index
    %13 = vector.load %arg4[%c0_13, %c0_14] : memref<8x32xf32, #tpu.memory_space<vmem>>, vector<8x32xf32>
    %14 = vector.extract_strided_slice %12 {offsets = [0, 32], sizes = [8, 32], strides = [1, 1]} : vector<8x128xf32> to vector<8x32xf32>
    %15 = arith.negf %14 : vector<8x32xf32>
    %16 = math.exp %15 : vector<8x32xf32>
    %cst_15 = arith.constant 1.000000e+00 : f32
    %17 = vector.broadcast %cst_15 : f32 to vector<8x32xf32>
    %18 = arith.addf %17, %16 : vector<8x32xf32>
    %19 = arith.divf %17, %18 : vector<8x32xf32>
    %20 = arith.mulf %19, %13 : vector<8x32xf32>
    %21 = vector.extract_strided_slice %12 {offsets = [0, 0], sizes = [8, 32], strides = [1, 1]} : vector<8x128xf32> to vector<8x32xf32>
    %22 = arith.negf %21 : vector<8x32xf32>
    %23 = math.exp %22 : vector<8x32xf32>
    %cst_16 = arith.constant 1.000000e+00 : f32
    %24 = vector.broadcast %cst_16 : f32 to vector<8x32xf32>
    %25 = arith.addf %24, %23 : vector<8x32xf32>
    %26 = arith.divf %24, %25 : vector<8x32xf32>
    %27 = vector.extract_strided_slice %12 {offsets = [0, 64], sizes = [8, 32], strides = [1, 1]} : vector<8x128xf32> to vector<8x32xf32>
    %28 = math.tanh %27 : vector<8x32xf32>
    %29 = arith.mulf %26, %28 : vector<8x32xf32>
    %30 = arith.addf %20, %29 : vector<8x32xf32>
    %31 = vector.extract_strided_slice %12 {offsets = [0, 96], sizes = [8, 32], strides = [1, 1]} : vector<8x128xf32> to vector<8x32xf32>
    %32 = arith.negf %31 : vector<8x32xf32>
    %33 = math.exp %32 : vector<8x32xf32>
    %cst_17 = arith.constant 1.000000e+00 : f32
    %34 = vector.broadcast %cst_17 : f32 to vector<8x32xf32>
    %35 = arith.addf %34, %33 : vector<8x32xf32>
    %36 = arith.divf %34, %35 : vector<8x32xf32>
    %37 = math.tanh %30 : vector<8x32xf32>
    %38 = arith.mulf %36, %37 : vector<8x32xf32>
    %c0_18 = arith.constant 0 : index
    %c0_19 = arith.constant 0 : index
    %39 = vector.load %arg9[%c0_18, %c0_19] : memref<8x32xf32, #tpu.memory_space<vmem>>, vector<8x32xf32>
    tpu.vector_store %arg9[%c0_18, %c0_19], %30 {strides = array<i32>} : memref<8x32xf32, #tpu.memory_space<vmem>>, vector<8x32xf32>,
    %c0_20 = arith.constant 0 : index
    %c0_21 = arith.constant 0 : index
    %40 = vector.load %arg8[%c0_20, %c0_21] : memref<8x32xf32, #tpu.memory_space<vmem>>, vector<8x32xf32>
    tpu.vector_store %arg8[%c0_20, %c0_21], %38 {strides = array<i32>} : memref<8x32xf32, #tpu.memory_space<vmem>>, vector<8x32xf32>,
    return
  }
  func.func @transform_0(%arg0: i32, %arg1: i32) -> (i32, i32) {
    %c0_i32 = arith.constant 0 : i32
    %c0_i32_0 = arith.constant 0 : i32
    return %arg1, %c0_i32 : i32, i32
  }
  func.func @transform_1(%arg0: i32, %arg1: i32) -> (i32, i32) {
    %c0_i32 = arith.constant 0 : i32
    %c0_i32_0 = arith.constant 0 : i32
    return %arg1, %c0_i32 : i32, i32
  }
  func.func @transform_2(%arg0: i32, %arg1: i32) -> (i32, i32) {
    %c0_i32 = arith.constant 0 : i32
    return %arg1, %arg0 : i32, i32
  }
  func.func @transform_3(%arg0: i32, %arg1: i32) -> (i32, i32, i32) {
    %c0_i32 = arith.constant 0 : i32
    %c0_i32_0 = arith.constant 0 : i32
    %c0_i32_1 = arith.constant 0 : i32
    return %arg0, %c0_i32, %c0_i32_0 : i32, i32, i32
  }
  func.func @transform_4(%arg0: i32, %arg1: i32) -> (i32, i32, i32) {
    %c0_i32 = arith.constant 0 : i32
    %c0_i32_0 = arith.constant 0 : i32
    %c0_i32_1 = arith.constant 0 : i32
    return %arg0, %c0_i32, %c0_i32_0 : i32, i32, i32
  }
  func.func @transform_5(%arg0: i32, %arg1: i32) -> (i32, i32, i32) {
    %c0_i32 = arith.constant 0 : i32
    %c0_i32_0 = arith.constant 0 : i32
    %c0_i32_1 = arith.constant 0 : i32
    return %arg0, %c0_i32, %c0_i32_0 : i32, i32, i32
  }
  func.func @transform_6(%arg0: i32, %arg1: i32) -> (i32, i32) {
    %c0_i32 = arith.constant 0 : i32
    return %arg1, %arg0 : i32, i32
  }
  func.func @transform_7(%arg0: i32, %arg1: i32) -> (i32, i32) {
    %c0_i32 = arith.constant 0 : i32
    return %arg1, %arg0 : i32, i32
  }
}

</mosaic_0001>

<bundles_post_ra>
// kernel: tpu_custom_call.1
= control target key start
LH: loop header
LB: loop body
LE: loop exit
PB: predicated region body
PF: predicated region fallthrough
CT: control target
= control target key end

     0   :  { %13 = vsyncpa [#allocation3], 0  ;;  %s555_s0 = inlined_call_operand.hbm [shape: bf16[8,16], index: 0, kind: input, shape index: {}]   ;;  %s556_s1 = inlined_call_operand.hbm [shape: bf16[8,32], index: 1, kind: input, shape index: {}]   ;;  %s557_s2 = inlined_call_operand.hbm [shape: f32[8,32], index: 2, kind: input, shape index: {}]   ;;  %s558_s3 = inlined_call_operand.hbm [shape: bf16[1,16,128], index: 3, kind: input, shape index: {}]   ;;  %s559_s4 = inlined_call_operand.hbm [shape: bf16[1,32,128], index: 4, kind: input, shape index: {}]   ;;  %s560_s5 = inlined_call_operand.vmem [shape: f32[1,1,128], index: 5, kind: input, shape index: {}]   ;;  %s561_s6 = inlined_call_operand.hbm [shape: f32[8,32], index: 6, kind: output, shape index: {0}]   ;;  %s562_s7 = inlined_call_operand.hbm [shape: f32[8,32], index: 7, kind: output, shape index: {1}]  }
   0x1   :  { %14 = vsyncpa [#allocation6], 0 }
   0x2   :  { %15 = vsyncpa [#allocation9], 0 }
   0x3   :  { %16 = vsyncpa [#allocation4], 0  ;;  %s34_s26 = sshll.u32 %s556_s1, 4  ;;  %s35_s26 = int_to_ptr.hbm [resolvable:$true] %s34_s26 }
   0x4   :  { %17 = vsyncpa [#allocation13], 0  ;;  %s468_s27 = smov [#allocation5]   ;;  %s55_s8 = sshll.u32 %s558_s3, 4  ;;  %s56_s8 = int_to_ptr.hbm [resolvable:$true] %s55_s8 }
   0x5   :  { %s36_s28 = sshll.u32 %s468_s27, 4  ;;  %s469_s9 = smov [#allocation8]   ;;  %s37_s28 = int_to_ptr.vmem [resolvable:$true] %s36_s28 }
   0x6   :  { %39 = dma.hbm_to_vmem [thread:$0]  %s35_s26, 64, %s37_s28, [#allocation6]  }
   0x7   :  { %s57_s10 = sshll.u32 %s469_s9, 4  ;;  %s470_s11 = smov 64   ;;  %s58_s10 = int_to_ptr.vmem [resolvable:$true] %s57_s10 }
   0x8   :  { %s471_s12 = smov 4   ;;  %s23_s14 = sshll.u32 %s555_s0, 4  ;;  %s24_s14 = int_to_ptr.hbm [resolvable:$true] %s23_s14 }
   0x9   :  { %63 = dma.hbm_to_vmem [thread:$0]  %s56_s8, 128, %s58_s10, [#allocation9], %s470_s11, %s470_s11, %s471_s12  }
   0xa   :  { %s472_s15 = smov [#allocation2]   ;;  %s45_s18 = sshll.u32 %s557_s2, 4  ;;  %s46_s18 = int_to_ptr.hbm [resolvable:$true] %s45_s18 }
   0xb   :  { %s25_s16 = sshll.u32 %s472_s15, 4  ;;  %s473_s19 = smov [#allocation7]   ;;  %s26_s16 = int_to_ptr.vmem [resolvable:$true] %s25_s16 }
   0xc   :  { %28 = dma.hbm_to_vmem [thread:$0]  %s24_s14, 64, %s26_s16, [#allocation3]  }
   0xd   :  { %s47_s20 = sshll.u32 %s473_s19, 4  ;;  %s68_s23 = sshll.u32 %s559_s4, 4  ;;  %s48_s20 = int_to_ptr.vmem [resolvable:$true] %s47_s20  ;;  %s69_s23 = int_to_ptr.hbm [resolvable:$true] %s68_s23 }
   0xe   :  { %50 = dma.hbm_to_vmem [thread:$0]  %s46_s18, 128, %s48_s20, [#allocation6]  }
   0xf   :  { %s474_s0 = smov [#allocation10]  }
  0x10   :  { %s70_s24 = sshll.u32 %s474_s0, 4  ;;  %s71_s24 = int_to_ptr.vmem [resolvable:$true] %s70_s24 }
  0x11   :  { %76 = dma.hbm_to_vmem [thread:$0]  %s69_s23, 256, %s71_s24, [#allocation9], %s470_s11, %s470_s11, %s471_s12  }
  0x12   :  { %458 = dma.done.wait [#allocation3], 64  }
  0x13   :  { %459 = vsyncadd [#allocation3], 4294967232 }
  0x14   :  { %460 = dma.done.wait [#allocation6], 192  }
  0x15   :  { %461 = vsyncadd [#allocation6], 4294967104 }
  0x16   :  { %462 = dma.done.wait [#allocation9], 384  }
  0x17   :  { %463 = vsyncadd [#allocation9], 4294966912  ;;  %v269_v0 = vld [vmem:[#allocation10 + $0x8] sm:$0xff]  ;;  %v267_v1 = vld [vmem:[#allocation8] sm:$0xff]  ;;  %vm143_vm0 = vcmask 130048   ;;  %vm120_vm1 = vcmask 261120  }
  0x18   :  { %130 = vmatpush.bf16.msra.mxu0 %v269_v0  ;;  %154 = vmatpush.bf16.msra.mxu1 %v267_v1  ;;  %v100_v2 = vld [vmem:[#allocation2] sm:$0xf]  ;;  %v268_v3 = vld [vmem:[#allocation10] sm:$0xff]  ;;  %v103_v4 = vld [vmem:[#allocation5] sm:$0xf]  ;;  %s475_s25 = smov 32  }
  0x19   :  { %v281_v6 = vld [vmem:[%s560_s5] ss:$0 sm:$0xff]  ;;  %v165_v13 = vld [vmem:[#allocation7] sm:$0xff]  ;;  %s476_s5 = smov 96   ;;  %s477_s26 = smov [#allocation12]  }
  0x1a   :  { %s233_s27 = sshll.u32 %s477_s26, 4  ;;  %s235_s30 = sshll.u32 %s562_s7, 4  ;;  %s234_s27 = int_to_ptr.vmem [resolvable:$true] %s233_s27  ;;  %s236_s30 = int_to_ptr.hbm [resolvable:$true] %s235_s30 }
  0x1b   :  { %265 = vmatmul.msk.bf16.vlgmr.msra.gmra.mxu1 %vm143_vm0, %v100_v2  ;;  %s478_s8 = smov [#allocation11]   ;;  %s224_s12 = sshll.u32 %s561_s6, 4  ;;  %s225_s12 = int_to_ptr.hbm [resolvable:$true] %s224_s12 }
  0x1c   :  { %131 = vmatpush.bf16.msra.mxu0 %v268_v3  ;;  %s222_s9 = sshll.u32 %s478_s8, 4  ;;  %s223_s9 = int_to_ptr.vmem [resolvable:$true] %s222_s9 }
  0x1f   :  { %260 = vmatmul.msk.bf16.vlgmr.msra.gmra.mxu0 %vm120_vm1, %v103_v4 }
  0x98   :  { %v156_v5 = vpop.f32.mrf.mxu1 }
  0x9c   :  { %v133_v7 = vpop.f32.mrf.mxu0 }
  0x9d   :  { %v157_v8 = vadd.f32 %v156_v5, %v133_v7 }
  0x9f   :  { %v164_v9 = vadd.f32 %v281_v6, %v157_v8 }
  0xa0   :  { %v158_v10 = vpop.f32.mrf.mxu1 }
  0xa1   :  { %282 = vtanh.f32 %v164_v9  ;;  %v266_v14 = vmul.f32 -1.442695, %v164_v9 }
  0xa3   :  { %284 = vpow2.f32 %v266_v14 }
  0xa4   :  { %v135_v11 = vpop.f32.mrf.mxu0 }
  0xa7   :  { %v283_v12 = vpop.eup %282 }
  0xa8   :  { %192 = vrot.lane.b32.xlu0 %v283_v12, %s470_s11 }
  0xa9   :  { %v285_v15 = vpop.eup %284 }
  0xaa   :  { %v169_v16 = vadd.f32 1.0, %v285_v15 }
  0xac   :  { %286 = vrcp.f32 %v169_v16  ;;  %v181_v22 = vand.u32 2147483648, %v169_v16  ;;  %vm175_vm3 = vweird.f32 %v169_v16  ;;  %v179_v23 = vand.u32 2147483647, %v169_v16 }
  0xae   :  { %v182_v25 = vor.u32 1.1754944e-38, %v181_v22  ;;  %vm180_vm5 = vcmp.eq.f32.partialorder %v179_v23, 8.507059e+37 }
  0xb0   :  { %186 = vrot.lane.b32.xlu0 %v165_v13, %s475_s25 }
  0xb2   :  { %v287_v17 = vpop.eup %286 }
  0xb3   :  { %v171_v18 = vmul.f32 %v287_v17, %v169_v16  ;;  %vm176_vm2 = vweird.f32 %v287_v17 }
  0xb4   :  { %vm177_vm4 = vmor %vm175_vm3, %vm176_vm2 }
  0xb5   :  { %v172_v19 = vsub.f32 1.0, %v171_v18 }
  0xb7   :  { %v173_v20 = vmul.f32 %v287_v17, %v172_v19 }
  0xb9   :  { %v174_v21 = vadd.f32 %v287_v17, %v173_v20 }
  0xbb   :  { %v178_v24 = vsel %vm177_vm4, %v287_v17, %v174_v21 }
  0xbc   :  { %v183_v27 = vsel %vm180_vm5, %v182_v25, %v178_v24 }
 0x11a   :  { %v193_v26 = vpop.permute.xlu0 %192 }
 0x11b   :  { %v195_v28 = vmul.f32 %v193_v26, %v183_v27 }
 0x11d   :  { %197 = vrot.lane.b32.xlu1 %v195_v28, %s475_s25 }
 0x122   :  { %v187_v29 = vpop.permute.xlu0 %186 }
 0x123   :  { %v189_v30 = vmul.f32 %v187_v29, %v183_v27 }
 0x18f   :  { %v198_v31 = vpop.permute.xlu1 %197 }
 0x190   :  { %v200_v32 = vadd.f32 %v198_v31, %v189_v30 }
 0x192   :  { %288 = vtanh.f32 %v200_v32  ;;  %208 = vrot.lane.b32.xlu2 %v200_v32, %s476_s5 }
 0x198   :  { %v289_v33 = vpop.eup %288 }
 0x199   :  { %203 = vrot.lane.b32.xlu1 %v289_v33, %s470_s11 }
 0x1ec   :  { %v209_v34 = vpop.permute.xlu2 %208 }
 0x1ed   :  { %211 = vst.msk [vmem:[#allocation12] sm:$0xff] %vm120_vm1, %v209_v34 }
 0x1ee   :  { %238 = dma.vmem_to_hbm [thread:$0]  %s234_s27, 128, %s236_s30, [#allocation13]  }
 0x20b   :  { %v204_v35 = vpop.permute.xlu1 %203 }
 0x20c   :  { %v206_v36 = vmul.f32 %v204_v35, %v183_v27 }
 0x20e   :  { %213 = vrot.lane.b32.xlu2 %v206_v36, %s475_s25 }
 0x268   :  { %v214_v37 = vpop.permute.xlu2 %213 }
 0x269   :  { %216 = vst.msk [vmem:[#allocation11] sm:$0xff] %vm120_vm1, %v214_v37 }
 0x26a   :  { %227 = dma.vmem_to_hbm [thread:$0]  %s223_s9, 128, %s225_s12, [#allocation4]  }
 0x26b   :  { %464 = dma.done.wait [#allocation4], 128  }
 0x26c   :  { %465 = vsyncadd [#allocation4], 4294967168 }
 0x26d   :  { %466 = dma.done.wait [#allocation13], 128  }
 0x26e   :  { %467 = vsyncadd [#allocation13], 4294967168 }
 0x26f   :  { %247 = vsyncpa [#allocation3], 1 }
 0x270   :  { %248 = vsyncpa [#allocation6], 1 }
 0x271   :  { %249 = vsyncpa [#allocation9], 1 }
 0x272   :  { %250 = vsyncpa [#allocation4], 1 }
 0x273   :  { %251 = vsyncpa [#allocation13], 1 }

</bundles_post_ra>
